<compile_context>
chip_gen: v7x
topology: tpu7x:2x2x1
jax: 0.10.0
libtpu: 0.0.40
codegen_flags: <defaults>
</compile_context>

<pallas_src>
import jax
import jax.numpy as jnp
from jax.experimental import pallas as pl
from jax.experimental.pallas import tpu as pltpu

_LANE = 128  # lane width (last-dim granularity)


def _sublane(dtype):
    """Dtype-aware sublane packing: rows must align to this for unmasked vld/vst."""
    itemsize = jnp.dtype(dtype).itemsize
    return {4: 8, 2: 16, 1: 32}.get(itemsize, 8)


def _tpu_kind():
    try:
        return jax.devices()[0].device_kind.lower()
    except Exception:
        return ""


def _tile_params(kind):
    """(tile_bytes_per_buffer, vmem_limit_bytes) per TPU generation."""
    if "v5" in kind or kind == "":
        # v5e: 16 MiB default scoped VMEM; 2 MiB x (2 in + 2 out bufs) = 8 MiB.
        return 2 * 1024 * 1024, None
    # v6e / v7x: 3.2 (v7x) / 1.4 (v6e) TB/s HBM -> bigger tiles amortize the
    # ~0.35 us/step overhead; 4 MiB x 4 bufs = 16 MiB, give explicit headroom.
    return 4 * 1024 * 1024, 32 * 1024 * 1024


def _add_one_kernel(x_ref, o_ref):
    # Hot path: one vld, one VPU add of the constant 1, one vst (HBM-bound).
    o_ref[...] = x_ref[...] + jnp.asarray(1, dtype=o_ref.dtype)


def _run_rowtiled(x2d, rows, cols, sub, itemsize, tile_bytes, vmem_limit,
                  prefer_two_tiles):
    # Max rows per tile from the byte budget, sublane-aligned, >= one sublane pack.
    max_tr = max((tile_bytes // (cols * itemsize)) // sub * sub, sub)
    num_tiles = pl.cdiv(rows, max_tr)
    if prefer_two_tiles and num_tiles < 2 and rows >= 2 * sub:
        num_tiles = 2  # let both v7x TensorCores participate on medium inputs
    # Balanced, sublane-aligned tile height (last tile may be partial; legal).
    tr = ((pl.cdiv(rows, num_tiles) + sub - 1) // sub) * sub
    tr = min(tr, rows)
    grid = (pl.cdiv(rows, tr),)
    return pl.pallas_call(
        _add_one_kernel,
        out_shape=jax.ShapeDtypeStruct((rows, cols), x2d.dtype),
        grid=grid,
        in_specs=[pl.BlockSpec((tr, cols), lambda i: (i, 0))],
        out_specs=pl.BlockSpec((tr, cols), lambda i: (i, 0)),
        compiler_params=pltpu.CompilerParams(
            dimension_semantics=("parallel",),
            vmem_limit_bytes=vmem_limit,
        ),
    )(x2d)


def network_forward(x):
    """Pallas implementation of `network.forward`: output = input + 1."""
    x = jnp.asarray(x)
    orig_shape = x.shape
    n = x.size
    dtype = x.dtype
    sub = _sublane(dtype)
    itemsize = jnp.dtype(dtype).itemsize

    # Scalars / tiny arrays: launch + DMA setup dominates; fused XLA add wins.
    if n < sub * _LANE:
        return x + jnp.asarray(1, dtype=dtype)

    kind = _tpu_kind()
    tile_bytes, vmem_limit = _tile_params(kind)
    prefer_two_tiles = "v7" in kind  # 2 TensorCores per chip on v7x

    # ---- Path A: pad-free lane/sublane-dense reblock (contiguous reshape is free).
    for cols in (2048, 1024, 512, 256, 128):
        if n % cols == 0 and (n // cols) % sub == 0:
            rows = n // cols
            out2d = _run_rowtiled(x.reshape(rows, cols), rows, cols, sub,
                                  itemsize, tile_bytes, vmem_limit,
                                  prefer_two_tiles)
            return out2d.reshape(orig_shape)

    # ---- Path B: grid over leading dims, trailing block equal to the full
    # last-two dims (legal under the "divisible by (8,128) OR equal to full
    # dim" rule) -> still no pad, no slice.
    if x.ndim >= 2:
        r, c = x.shape[-2], x.shape[-1]
        lead = 1
        for d in x.shape[:-2]:
            lead *= d
        if r * c * itemsize <= 8 * 1024 * 1024:
            x3 = x.reshape(lead, r, c)
            out3 = pl.pallas_call(
                _add_one_kernel,
                out_shape=jax.ShapeDtypeStruct((lead, r, c), dtype),
                grid=(lead,),
                in_specs=[pl.BlockSpec((1, r, c), lambda i: (i, 0, 0))],
                out_specs=pl.BlockSpec((1, r, c), lambda i: (i, 0, 0)),
                compiler_params=pltpu.CompilerParams(
                    dimension_semantics=("parallel",),
                    vmem_limit_bytes=vmem_limit,
                ),
            )(x3)
            return out3.reshape(orig_shape)

    # ---- Path C: fused XLA add is one HBM pass; pad + kernel + slice would be ~3x.
    return x + jnp.asarray(1, dtype=dtype)


if __name__ == "__main__":
    key = jax.random.PRNGKey(0)

    # 1) Small 4-D tensor -> Path A (pad-free reblock to (8, 256) f32 slab).
    x = jax.random.normal(key, (2, 4, 16, 16), dtype=jnp.float32)
    out = network_forward(x)
    jax.block_until_ready(out)
    assert out.shape == x.shape
    assert jnp.allclose(out, x + 1.0, atol=1e-6), "4-D case mismatch"

    # 2) Non-128-aligned trailing dim -> Path B (full-dims block, no pad/slice).
    x2 = jax.random.normal(jax.random.PRNGKey(1), (7, 300), dtype=jnp.float32)
    out2 = network_forward(x2)
    jax.block_until_ready(out2)
    assert out2.shape == x2.shape
    assert jnp.allclose(out2, x2 + 1.0, atol=1e-6), "padded-shape case mismatch"

    # 3) bf16 input -> exercises dtype-aware sublane alignment (pack of 16).
    x3 = jax.random.normal(jax.random.PRNGKey(2), (16, 8, 128),
                           dtype=jnp.bfloat16)
    out3 = network_forward(x3)
    jax.block_until_ready(out3)
    ref3 = x3 + jnp.asarray(1, dtype=jnp.bfloat16)
    assert out3.shape == x3.shape
    assert jnp.allclose(out3.astype(jnp.float32), ref3.astype(jnp.float32),
                        atol=1e-2), "bf16 case mismatch"

    # 4) Scalar input, matching the original module usage: torch.tensor(1.0).
    xs = jnp.float32(1.0)
    outs = network_forward(xs)
    jax.block_until_ready(outs)
    assert outs.shape == xs.shape
    assert jnp.allclose(outs, xs + 1.0), "scalar case mismatch"

    print("KERNEL_OK")
</pallas_src>

<mosaic_0001>
module attributes {stable_mosaic.version = 11 : i64} {
  func.func @_add_one_kernel(%arg0: i32, %arg1: memref<8x256xf32, #tpu.memory_space<vmem>>, %arg2: memref<8x256xf32, #tpu.memory_space<vmem>>) attributes {dimension_semantics = [#tpu.dimension_semantics<parallel>], iteration_bounds = array<i64: 1>, scalar_prefetch = 0 : i64, scratch_operands = 0 : i64, tpu.core_type = #tpu.core_type<tc>, window_params = [{transform_indices = @transform_0, window_bounds = array<i64: 8, 256>}, {transform_indices = @transform_1, window_bounds = array<i64: 8, 256>}]} {
    %c0 = arith.constant 0 : index
    %c0_0 = arith.constant 0 : index
    %0 = vector.load %arg1[%c0, %c0_0] : memref<8x256xf32, #tpu.memory_space<vmem>>, vector<8x256xf32>
    %cst = arith.constant 1.000000e+00 : f32
    %1 = vector.broadcast %cst : f32 to vector<8x256xf32>
    %2 = arith.addf %0, %1 : vector<8x256xf32>
    %c0_1 = arith.constant 0 : index
    %c0_2 = arith.constant 0 : index
    %3 = vector.load %arg2[%c0_1, %c0_2] : memref<8x256xf32, #tpu.memory_space<vmem>>, vector<8x256xf32>
    tpu.vector_store %arg2[%c0_1, %c0_2], %2 {strides = array<i32>} : memref<8x256xf32, #tpu.memory_space<vmem>>, vector<8x256xf32>,
    return
  }
  func.func @transform_0(%arg0: i32) -> (i32, i32) {
    %c0_i32 = arith.constant 0 : i32
    %c0_i32_0 = arith.constant 0 : i32
    return %arg0, %c0_i32 : i32, i32
  }
  func.func @transform_1(%arg0: i32) -> (i32, i32) {
    %c0_i32 = arith.constant 0 : i32
    %c0_i32_0 = arith.constant 0 : i32
    return %arg0, %c0_i32 : i32, i32
  }
}

</mosaic_0001>

<bundles_post_ra>
// kernel: tpu_custom_call.1
= control target key start
LH: loop header
LB: loop body
LE: loop exit
PB: predicated region body
PF: predicated region fallthrough
CT: control target
= control target key end

     0   :  { %6 = vsyncpa [#allocation3], 0  ;;  %s128_s0 = inlined_call_operand.hbm [shape: f32[8,256], index: 0, kind: input, shape index: {}]   ;;  %s129_s1 = inlined_call_operand.hbm [shape: f32[8,256], index: 1, kind: output, shape index: {}]  }
   0x1   :  { %7 = vsyncpa [#allocation4], 0  ;;  %s92_s6 = smov [#allocation2]   ;;  %s44_s10 = scalar_lea.hbm %s128_s0, 256 }
   0x2   :  { %s14_s7 = sshll.u32 %s92_s6, 4  ;;  %p45_p0 = scmp.ne.s32.totalorder %s128_s0, %s44_s10  ;;  %s15_s7 = int_to_ptr.vmem [resolvable:$true] %s14_s7 }
   0x3   :  { %p48_p1 = scmp.lt.u32.totalorder %s44_s10, %s128_s0 }
   0x5   :  { %p50_p2 = pnand %p48_p1, %p45_p0 }
   0x7   :  { %53 = shalt.err (!%p50_p2)
}
   0x8   :  { %s54_s15 = scalar_lea.vmem %s15_s7, 256  ;;  %p59_p4 = scmp.lt.s32.totalorder %s15_s7, %s15_s7 }
   0x9   :  { %p55_p3 = scmp.ne.s32.totalorder %s15_s7, %s54_s15  ;;  %p60_p5 = scmp.lt.s32.totalorder %s54_s15, %s54_s15 }
   0xb   :  { %p61_p6 = por %p60_p5, %p59_p4 }
   0xd   :  { %p62_p7 = pnand %p61_p6, %p55_p3 }
   0xf   :  { %65 = shalt.err (!%p62_p7)
}
  0x10   :  { %17 = dma.hbm_to_vmem [thread:$0]  %s128_s0, 256, %s15_s7, [#allocation3]  }
  0x11   :  { %88 = dma.done.wait [#allocation3], 256  }
  0x12   :  { %89 = vsyncadd [#allocation3], 4294967040  ;;  %s93_s18 = smov [#allocation5]   ;;  %v21_v0 = vld [vmem:[#allocation2] sm:$0xff]  ;;  %v22_v1 = vld [vmem:[#allocation2 + $0x8] sm:$0xff] }
  0x13   :  { %s33_s19 = sshll.u32 %s93_s18, 4  ;;  %v23_v2 = vadd.f32 1.0, %v21_v0  ;;  %v24_v3 = vadd.f32 1.0, %v22_v1  ;;  %s34_s19 = int_to_ptr.vmem [resolvable:$true] %s33_s19 }
  0x14   :  { %s66_s20 = scalar_lea.vmem %s34_s19, 256  ;;  %p71_p9 = scmp.lt.s32.totalorder %s34_s19, %s34_s19 }
  0x15   :  { %25 = vst [vmem:[#allocation5] sm:$0xff] %v23_v2  ;;  %26 = vst [vmem:[#allocation5 + $0x8] sm:$0xff] %v24_v3  ;;  %p67_p8 = scmp.ne.s32.totalorder %s34_s19, %s66_s20  ;;  %p72_p10 = scmp.lt.s32.totalorder %s66_s20, %s66_s20 }
  0x17   :  { %p73_p11 = por %p72_p10, %p71_p9 }
  0x19   :  { %p74_p12 = pnand %p73_p11, %p67_p8 }
  0x1b   :  { %77 = shalt.err (!%p74_p12)
}
  0x1c   :  { %s78_s22 = scalar_lea.hbm %s129_s1, 256 }
  0x1d   :  { %p79_p13 = scmp.ne.s32.totalorder %s129_s1, %s78_s22  ;;  %p82_p0 = scmp.lt.u32.totalorder %s78_s22, %s129_s1 }
  0x1f   :  { %p84_p1 = pnand %p82_p0, %p79_p13 }
  0x21   :  { %87 = shalt.err (!%p84_p1)
}
  0x22   :  { %36 = dma.vmem_to_hbm [thread:$0]  %s34_s19, 256, %s129_s1, [#allocation4]  }
  0x23   :  { %90 = dma.done.wait [#allocation4], 256  }
  0x24   :  { %91 = vsyncadd [#allocation4], 4294967040 }
  0x25   :  { %40 = vsyncpa [#allocation3], 1 }
  0x26   :  { %41 = vsyncpa [#allocation4], 1 }

</bundles_post_ra>
